<compile_context>
chip_gen: v6e
topology: v6e:2x2x1
jax: 0.10.0
libtpu: 0.0.40
codegen_flags: <defaults>
</compile_context>

<pallas_src>
import numpy as np
import jax
import jax.numpy as jnp
from jax.experimental import pallas as pl
from jax.experimental.pallas import tpu as pltpu


# ----------------------------------------------------------------------------
# Fixed Sobel taps (only used by the pure-JAX reference; the kernel uses the
# separable formulation with the same weights baked in as constants).
# ----------------------------------------------------------------------------
_EDGE_KX = np.array([[1, 0, -1], [2, 0, -2], [1, 0, -1]], dtype=np.float32)
_EDGE_KY = np.array([[1, 2, 1], [0, 0, 0], [-1, -2, -1]], dtype=np.float32)
EDGE_K = np.stack((_EDGE_KX, _EDGE_KY)).reshape(2, 1, 3, 3)  # (out=2, in=1, 3, 3)

# VMEM budgeting: one block is BN*TH*W input elements + 2*BN*TH*W output
# elements (f32), double-buffered, plus a handful of in-kernel temporaries
# -> ~48 B per block element.  1<<18 elements keeps the working set ~12 MiB,
# which fits even v5e's 16 MiB default scoped VMEM with headroom.
_ELEM_BUDGET = 1 << 18
_VMEM_LIMIT_BYTES = 48 * 1024 * 1024


def _pick_tile_h(H: int, W: int) -> int:
    """Largest divisor of H such that TH*W fits the element budget.

    Prefers TH that is a multiple of 8 (sublane-aligned block) unless the whole
    image height fits in one tile.
    """
    cap = max(1, _ELEM_BUDGET // max(1, W))
    if H <= cap:
        return H
    divs = [d for d in range(1, min(H, cap) + 1) if H % d == 0]
    aligned = [d for d in divs if d % 8 == 0]
    return max(aligned) if aligned else max(divs)


def _pick_batch(N: int, TH: int, W: int, num_t: int) -> int:
    """Largest divisor of N that fits the budget; keeps >= 2 grid steps if possible."""
    cap = max(1, _ELEM_BUDGET // max(1, TH * W))
    divs = [d for d in range(1, min(N, cap) + 1) if N % d == 0]
    bn = max(divs)
    # v7x has 2 TensorCores sharing HBM: make sure both get a grid step when we can.
    if (N // bn) * num_t < 2 and N > 1:
        smaller = [d for d in divs if d <= N // 2]
        if smaller:
            bn = max(smaller)
    return bn


def _build_halos(x3: jax.Array, TH: int):
    """Per-tile halo rows: row above / below each H-tile (zeros at image edges).

    x3: (N, H, W)  ->  (halo_top, halo_bot), each (N, num_t, 1, W).
    """
    N, H, W = x3.shape
    num_t = H // TH
    zrow = jnp.zeros((N, 1, W), x3.dtype)
    if num_t > 1:
        top = jnp.concatenate([zrow, x3[:, TH - 1:H - 1:TH, :]], axis=1)
        bot = jnp.concatenate([x3[:, TH:H:TH, :], zrow], axis=1)
    else:
        top, bot = zrow, zrow
    return top.reshape(N, num_t, 1, W), bot.reshape(N, num_t, 1, W)


def _sobel_kernel(x_ref, ht_ref, hb_ref, out_ref):
    """One (BN, TH, W) row-tile of BN images -> (BN, 2, TH, W) Sobel gx/gy.

    x_ref:  (BN, TH, W)    unpadded image rows
    ht_ref: (BN, 1, 1, W)  row just above the tile (zeros at top image edge)
    hb_ref: (BN, 1, 1, W)  row just below the tile (zeros at bottom image edge)
    out_ref:(BN, 2, TH, W)
    """
    BN, TH, W = x_ref.shape
    b = x_ref[...]                       # (BN, TH, W)
    up_halo = ht_ref[...][:, 0, :, :]    # (BN, 1, W)
    dn_halo = hb_ref[...][:, 0, :, :]    # (BN, 1, W)

    # Rows i-1 and i+1 of the zero-padded image (padding fused in-kernel).
    if TH > 1:
        p_up = jnp.concatenate([up_halo, b[:, :TH - 1, :]], axis=1)  # (BN, TH, W)
        p_dn = jnp.concatenate([b[:, 1:, :], dn_halo], axis=1)       # (BN, TH, W)
    else:
        p_up, p_dn = up_halo, dn_halo

    # Separable Sobel, vertical pass (sublane shifts):
    s = p_up + 2.0 * b + p_dn            # [1, 2, 1]^T  smoothing  (feeds gx)
    d = p_up - p_dn                      # [1, 0, -1]^T derivative (feeds gy)

    # Horizontal pass (lane shifts), with zero column padding done in-register.
    zc = jnp.zeros((BN, TH, 1), jnp.float32)
    sp = jnp.concatenate([zc, s, zc], axis=2)   # (BN, TH, W+2)
    dp = jnp.concatenate([zc, d, zc], axis=2)

    gx = sp[:, :, 0:W] - sp[:, :, 2:W + 2]               # [1, 0, -1] horizontal
    gy = dp[:, :, 0:W] + 2.0 * d + dp[:, :, 2:W + 2]     # [1, 2, 1] horizontal

    out_ref[:, 0, :, :] = gx
    out_ref[:, 1, :, :] = gy


def sobel_pallas(x: jax.Array) -> jax.Array:
    """x: (N, 1, H, W) -> (N, 2, H, W) float32 (same semantics as the PyTorch module)."""
    N, C, H, W = x.shape
    assert C == 1, "Sobel module expects a single input channel"

    x3 = x.astype(jnp.float32)[:, 0, :, :]     # (N, H, W) -- a free reshape, no pad

    TH = _pick_tile_h(H, W)
    num_t = H // TH
    BN = _pick_batch(N, TH, W, num_t)
    grid = (N // BN, num_t)

    halo_top, halo_bot = _build_halos(x3, TH)  # (N, num_t, 1, W) each

    # TODO(synk): for W < 128 the output stores are lane-masked; a lane-dense
    # repacking of (H, W) would need an in-kernel relayout that costs more than
    # it saves at these sizes, so it is intentionally not done here.
    out = pl.pallas_call(
        _sobel_kernel,
        out_shape=jax.ShapeDtypeStruct((N, 2, H, W), jnp.float32),
        grid_spec=pltpu.PrefetchScalarGridSpec(
            num_scalar_prefetch=0,
            grid=grid,
            in_specs=[
                pl.BlockSpec((BN, TH, W), lambda n, t: (n, t, 0)),
                pl.BlockSpec((BN, 1, 1, W), lambda n, t: (n, t, 0, 0)),
                pl.BlockSpec((BN, 1, 1, W), lambda n, t: (n, t, 0, 0)),
            ],
            out_specs=pl.BlockSpec((BN, 2, TH, W), lambda n, t: (n, 0, t, 0)),
        ),
        compiler_params=pltpu.CompilerParams(
            dimension_semantics=("parallel", "parallel"),
            vmem_limit_bytes=_VMEM_LIMIT_BYTES,
        ),
        cost_estimate=pl.CostEstimate(
            flops=10 * N * H * W,
            transcendentals=0,
            bytes_accessed=12 * N * H * W,
        ),
    )(x3, halo_top, halo_bot)

    # PyTorch: out.contiguous().view(-1, 2, H, W) — already (N, 2, H, W).
    return out


def sobel_reference(x: jax.Array) -> jax.Array:
    """Pure-JAX reference (direct 3x3 tap loop) for validation."""
    N, C, H, W = x.shape
    xp = jnp.pad(x[:, 0, :, :].astype(jnp.float32), ((0, 0), (1, 1), (1, 1)))
    outs = []
    for oc in range(2):
        acc = jnp.zeros((N, H, W), jnp.float32)
        for di in range(3):
            for dj in range(3):
                w = float(EDGE_K[oc, 0, di, dj])
                if w != 0.0:
                    acc = acc + w * xp[:, di:di + H, dj:dj + W]
        outs.append(acc)
    return jnp.stack(outs, axis=1)  # (N, 2, H, W)


if __name__ == "__main__":
    key = jax.random.PRNGKey(0)
    N, C, H, W = 2, 1, 16, 16
    x = jax.random.normal(key, (N, C, H, W), dtype=jnp.float32)

    out = jax.block_until_ready(sobel_pallas(x))
    ref = jax.block_until_ready(sobel_reference(x))

    assert out.shape == (N, 2, H, W), out.shape
    np.testing.assert_allclose(np.asarray(out), np.asarray(ref), rtol=1e-5, atol=1e-5)

    print("KERNEL_OK")
</pallas_src>

<mosaic_0001>
module attributes {stable_mosaic.version = 11 : i64} {
  func.func @_sobel_kernel(%arg0: i32, %arg1: i32, %arg2: memref<1x16x16xf32, #tpu.memory_space<vmem>>, %arg3: memref<1x1x1x16xf32, #tpu.memory_space<vmem>>, %arg4: memref<1x1x1x16xf32, #tpu.memory_space<vmem>>, %arg5: memref<1x2x16x16xf32, #tpu.memory_space<vmem>>) attributes {dimension_semantics = [#tpu.dimension_semantics<parallel>, #tpu.dimension_semantics<parallel>], iteration_bounds = array<i64: 2, 1>, scalar_prefetch = 0 : i64, scratch_operands = 0 : i64, tpu.core_type = #tpu.core_type<tc>, window_params = [{transform_indices = @transform_0, window_bounds = array<i64: 1, 16, 16>}, {transform_indices = @transform_1, window_bounds = array<i64: 1, 1, 1, 16>}, {transform_indices = @transform_2, window_bounds = array<i64: 1, 1, 1, 16>}, {transform_indices = @transform_3, window_bounds = array<i64: 1, 2, 16, 16>}]} {
    %c0 = arith.constant 0 : index
    %c0_0 = arith.constant 0 : index
    %c0_1 = arith.constant 0 : index
    %0 = vector.load %arg2[%c0, %c0_0, %c0_1] : memref<1x16x16xf32, #tpu.memory_space<vmem>>, vector<1x16x16xf32>
    %c0_2 = arith.constant 0 : index
    %c0_3 = arith.constant 0 : index
    %c0_4 = arith.constant 0 : index
    %c0_5 = arith.constant 0 : index
    %1 = vector.load %arg3[%c0_2, %c0_3, %c0_4, %c0_5] : memref<1x1x1x16xf32, #tpu.memory_space<vmem>>, vector<1x1x1x16xf32>
    %2 = vector.shape_cast %1 : vector<1x1x1x16xf32> to vector<1x1x16xf32>
    %c0_6 = arith.constant 0 : index
    %c0_7 = arith.constant 0 : index
    %c0_8 = arith.constant 0 : index
    %c0_9 = arith.constant 0 : index
    %3 = vector.load %arg4[%c0_6, %c0_7, %c0_8, %c0_9] : memref<1x1x1x16xf32, #tpu.memory_space<vmem>>, vector<1x1x1x16xf32>
    %4 = vector.shape_cast %3 : vector<1x1x1x16xf32> to vector<1x1x16xf32>
    %5 = vector.extract_strided_slice %0 {offsets = [0, 0, 0], sizes = [1, 15, 16], strides = [1, 1, 1]} : vector<1x16x16xf32> to vector<1x15x16xf32>
    %6 = tpu.concatenate %2, %5 in 1 : vector<1x1x16xf32>, vector<1x15x16xf32> -> vector<1x16x16xf32>
    %7 = vector.extract_strided_slice %0 {offsets = [0, 1, 0], sizes = [1, 15, 16], strides = [1, 1, 1]} : vector<1x16x16xf32> to vector<1x15x16xf32>
    %8 = tpu.concatenate %7, %4 in 1 : vector<1x15x16xf32>, vector<1x1x16xf32> -> vector<1x16x16xf32>
    %cst = arith.constant 2.000000e+00 : f32
    %9 = vector.broadcast %cst : f32 to vector<1x16x16xf32>
    %10 = arith.mulf %9, %0 : vector<1x16x16xf32>
    %11 = arith.addf %6, %10 : vector<1x16x16xf32>
    %12 = arith.addf %11, %8 : vector<1x16x16xf32>
    %13 = arith.subf %6, %8 : vector<1x16x16xf32>
    %cst_10 = arith.constant 0.000000e+00 : f32
    %14 = vector.broadcast %cst_10 : f32 to vector<1x16x1xf32>
    %15 = tpu.concatenate %14, %12, %14 in 2 : vector<1x16x1xf32>, vector<1x16x16xf32>, vector<1x16x1xf32> -> vector<1x16x18xf32>
    %16 = tpu.concatenate %14, %13, %14 in 2 : vector<1x16x1xf32>, vector<1x16x16xf32>, vector<1x16x1xf32> -> vector<1x16x18xf32>
    %17 = vector.extract_strided_slice %15 {offsets = [0, 0, 0], sizes = [1, 16, 16], strides = [1, 1, 1]} : vector<1x16x18xf32> to vector<1x16x16xf32>
    %18 = vector.extract_strided_slice %15 {offsets = [0, 0, 2], sizes = [1, 16, 16], strides = [1, 1, 1]} : vector<1x16x18xf32> to vector<1x16x16xf32>
    %19 = arith.subf %17, %18 : vector<1x16x16xf32>
    %20 = vector.extract_strided_slice %16 {offsets = [0, 0, 0], sizes = [1, 16, 16], strides = [1, 1, 1]} : vector<1x16x18xf32> to vector<1x16x16xf32>
    %cst_11 = arith.constant 2.000000e+00 : f32
    %21 = vector.broadcast %cst_11 : f32 to vector<1x16x16xf32>
    %22 = arith.mulf %21, %13 : vector<1x16x16xf32>
    %23 = arith.addf %20, %22 : vector<1x16x16xf32>
    %24 = vector.extract_strided_slice %16 {offsets = [0, 0, 2], sizes = [1, 16, 16], strides = [1, 1, 1]} : vector<1x16x18xf32> to vector<1x16x16xf32>
    %25 = arith.addf %23, %24 : vector<1x16x16xf32>
    %c0_12 = arith.constant 0 : index
    %c0_13 = arith.constant 0 : index
    %c0_14 = arith.constant 0 : index
    %c0_15 = arith.constant 0 : index
    %26 = vector.load %arg5[%c0_12, %c0_13, %c0_14, %c0_15] : memref<1x2x16x16xf32, #tpu.memory_space<vmem>>, vector<1x1x16x16xf32>
    %27 = vector.shape_cast %26 : vector<1x1x16x16xf32> to vector<1x16x16xf32>
    %28 = vector.shape_cast %19 : vector<1x16x16xf32> to vector<1x1x16x16xf32>
    tpu.vector_store %arg5[%c0_12, %c0_13, %c0_14, %c0_15], %28 {strides = array<i32>} : memref<1x2x16x16xf32, #tpu.memory_space<vmem>>, vector<1x1x16x16xf32>,
    %c0_16 = arith.constant 0 : index
    %c1 = arith.constant 1 : index
    %c0_17 = arith.constant 0 : index
    %c0_18 = arith.constant 0 : index
    %29 = vector.load %arg5[%c0_16, %c1, %c0_17, %c0_18] : memref<1x2x16x16xf32, #tpu.memory_space<vmem>>, vector<1x1x16x16xf32>
    %30 = vector.shape_cast %29 : vector<1x1x16x16xf32> to vector<1x16x16xf32>
    %31 = vector.shape_cast %25 : vector<1x16x16xf32> to vector<1x1x16x16xf32>
    tpu.vector_store %arg5[%c0_16, %c1, %c0_17, %c0_18], %31 {strides = array<i32>} : memref<1x2x16x16xf32, #tpu.memory_space<vmem>>, vector<1x1x16x16xf32>,
    return
  }
  func.func @transform_0(%arg0: i32, %arg1: i32) -> (i32, i32, i32) {
    %c0_i32 = arith.constant 0 : i32
    %c0_i32_0 = arith.constant 0 : i32
    return %arg0, %arg1, %c0_i32 : i32, i32, i32
  }
  func.func @transform_1(%arg0: i32, %arg1: i32) -> (i32, i32, i32, i32) {
    %c0_i32 = arith.constant 0 : i32
    %c0_i32_0 = arith.constant 0 : i32
    %c0_i32_1 = arith.constant 0 : i32
    return %arg0, %arg1, %c0_i32, %c0_i32_0 : i32, i32, i32, i32
  }
  func.func @transform_2(%arg0: i32, %arg1: i32) -> (i32, i32, i32, i32) {
    %c0_i32 = arith.constant 0 : i32
    %c0_i32_0 = arith.constant 0 : i32
    %c0_i32_1 = arith.constant 0 : i32
    return %arg0, %arg1, %c0_i32, %c0_i32_0 : i32, i32, i32, i32
  }
  func.func @transform_3(%arg0: i32, %arg1: i32) -> (i32, i32, i32, i32) {
    %c0_i32 = arith.constant 0 : i32
    %c0_i32_0 = arith.constant 0 : i32
    %c0_i32_1 = arith.constant 0 : i32
    return %arg0, %c0_i32, %arg1, %c0_i32_0 : i32, i32, i32, i32
  }
}

</mosaic_0001>

<bundles_post_ra>
// kernel: tpu_custom_call.1
= control target key start
LH: loop header
LB: loop body
LE: loop exit
PB: predicated region body
PF: predicated region fallthrough
CT: control target
= control target key end

     0   :  { %8 = vsyncpa [#allocation3], 0  ;;  %s956_s0 = inlined_call_operand.hbm [shape: f32[2,16,16], index: 0, kind: input, shape index: {}]   ;;  %s957_s1 = inlined_call_operand.hbm [shape: f32[2,1,1,16], index: 1, kind: input, shape index: {}]   ;;  %s958_s2 = inlined_call_operand.vmem [shape: f32[2,1,1,16], index: 2, kind: input, shape index: {}]   ;;  %s959_s3 = inlined_call_operand.hbm [shape: f32[2,2,16,16], index: 3, kind: output, shape index: {}]  }
   0x1   :  { %10 = vsyncpa [#allocation3 + $0x1], 0 }
   0x2   :  { %11 = vsyncpa [#allocation6], 0 }
   0x3   :  { %13 = vsyncpa [#allocation6 + $0x1], 0 }
   0x4   :  { %14 = vsyncpa [#allocation4], 0 }
   0x5   :  { %16 = vsyncpa [#allocation4 + $0x1], 0  ;;  %s762_s12 = smov 0   ;;  %s764_s13 = smov 0  }
   0x6   :  { %s766_s14 = smov 0   ;;  %s768_s15 = smov 0  }
   0x7   :  { %s770_s16 = smov 0   ;;  %s772_s17 = smov 0  }
   0x8 LB: > { %s497_s18 = sadd.s32 4294967295, %s731_s17   ;;  %s498_s19 = sadd.s32 4294967294, %s731_s17   ;;  %s731_s17 = sphi %s772_s17, %s22_s17   ;;  %s727_s16 = sphi %s770_s16, %s970_s16   ;;  %s723_s15 = sphi %s768_s15, %s969_s15   ;;  %s719_s14 = sphi %s766_s14, %s968_s14   ;;  %s715_s13 = sphi %s764_s13, %s967_s13   ;;  %s711_s12 = sphi %s762_s12, %s966_s12  }
   0x9   : > { %s34_s20 = sadd.s32 1, %s727_s16  ;;  %s43_s21 = sadd.s32 1, %s719_s14 }
   0xa   : > { %p36_p0 = scmp.ge.s32.totalorder %s34_s20, 2  ;;  %p50_p1 = scmp.ne.s32.totalorder %s719_s14, %s715_s13 }
   0xb   : > { %p51_p2 = scmp.eq.s32.totalorder %s731_s17, 0  ;;  %p56_p3 = scmp.ne.s32.totalorder %s715_s13, %s711_s12 }
   0xc   : > { %s972_s20 = smov (%p36_p0, %s34_s20), 0  ;;  %p57_p5 = scmp.eq.s32.totalorder %s497_s18, 0 }
   0xd   : > { %p803_p4 = por %p51_p2, %p50_p1  ;;  %s38_s23 = ssub.s32 %s727_s16, %s972_s20 }
   0xe   : > { %p138_p6 = scmp.eq.s32.totalorder %s497_s18, 1  ;;  %p41_p7 = scmp.eq.s32.totalorder %s38_s23, 0 }
   0xf   : > { %p809_p8 = por %p57_p5, %p56_p3  ;;  %p144_p10 = scmp.eq.s32.totalorder %s498_s19, 1 }
  0x10   : > { %p813_p9 = por %p138_p6, %p50_p1  ;;  %p500_p12 = scmp.ge.s32.totalorder %s731_s17, 2 }
  0x11   : > { %s818_s26 = scalar_select %p41_p7, %s719_s14, %s43_s21  }
  0x12   : > { %p820_p11 = por %p144_p10, %p56_p3  ;;  %p535_p13 = scmp.lt.s32.totalorder %s731_s17, 2 }
  0x13   : > { %s827_s28 = sand.u32 1, %s719_s14   ;;  %s516_s30 = sshll.u32 %s727_s16, 8 }
  0x14   : > { %s501_s29 = sshll.u32 %s827_s28, 4  ;;  %s176_s6 = scalar_lea.hbm %s956_s0, %s516_s30 }
  0x15   : > { %s168_s7 = scalar_lea.vmem [#allocation2], %s501_s29  ;;  %p836_p0 = pnand %p535_p13, %p803_p4 }
  0x16   : > { %s177_s8 = sshll.u32 %s168_s7, 4  ;;  %p505_p1 = scmp.ge.s32.totalorder %s731_s17, 1  ;;  %s178_s8 = int_to_ptr.vmem [resolvable:$true] %s177_s8 }
  0x17   : > { %s165_s10 = scalar_lea.sflag [#allocation3], %s827_s28  ;;  %p593_p2 = pneg %p836_p0 }
  0x18   : > { %s604_s11 = scalar_lea.vmem %s178_s8, 256  ;;  %s733_s18 = smov [#allocation2]  }
  0x19   : > { %p605_p3 = scmp.ne.s32.totalorder %s178_s8, %s604_s11  ;;  %s609_s19 = sshll.u32 %s733_s18, 4  ;;  %s610_s19 = int_to_ptr.vmem [resolvable:$false] %s609_s19 }
  0x1a   : > { %s611_s21 = scalar_lea.vmem %s610_s19, 512  ;;  %p612_p4 = scmp.lt.s32.totalorder %s178_s8, %s610_s19 }
  0x1b   : > { %p607_p5 = pnand %p605_p3, %p593_p2  ;;  %p613_p7 = scmp.lt.s32.totalorder %s611_s21, %s604_s11 }
  0x1d   : > { %p608_p6 = pneg %p607_p5  ;;  %p614_p10 = por %p613_p7, %p612_p4 }
  0x1f   : > { %p615_p13 = pnand %p614_p10, %p608_p6 }
  0x21   : > { %618 = shalt.err (!%p615_p13)
}
  0x22   : > { %s734_s22 = smov 128   ;;  %s735_s23 = smov 8  }
  0x23   : > { %527 = dma.hbm_to_vmem [thread:$0]  (!%p836_p0), %s176_s6, 256, %s178_s8, %s165_s10, %s734_s22, %s734_s22, %s735_s23  }
  0x24   : > { %p212_p3 = scmp.lt.s32.totalorder %s731_s17, 3  ;;  %s504_s29 = sshll.u32 %s727_s16, 4 }
  0x25   : > { %s196_s7 = scalar_lea.hbm %s957_s1, %s504_s29  ;;  %s190_s11 = scalar_lea.vmem [#allocation5], %s827_s28 }
  0x26   : > { %p853_p5 = pnand %p505_p1, %p212_p3  ;;  %s198_s18 = sshll.u32 %s190_s11, 4  ;;  %s199_s18 = int_to_ptr.vmem [resolvable:$true] %s198_s18 }
  0x27   : > { %s188_s19 = scalar_lea.sflag [#allocation6], %s827_s28  ;;  %s632_s21 = scalar_lea.vmem %s199_s18, 16 }
  0x28   : > { %p633_p6 = scmp.ne.s32.totalorder %s199_s18, %s632_s21  ;;  %s736_s6 = smov [#allocation5]  }
  0x29   : > { %s637_s8 = sshll.u32 %s736_s6, 4  ;;  %s638_s8 = int_to_ptr.vmem [resolvable:$false] %s637_s8 }
  0x2a   : > { %p635_p4 = pnand %p633_p6, %p593_p2  ;;  %s639_s10 = scalar_lea.vmem %s638_s8, 32 }
  0x2b   : > { %p640_p1 = scmp.lt.s32.totalorder %s199_s18, %s638_s8  ;;  %p641_p10 = scmp.lt.s32.totalorder %s639_s10, %s632_s21 }
  0x2c   : > { %p636_p7 = pneg %p635_p4 }
  0x2d   : > { %p642_p13 = por %p641_p10, %p640_p1 }
  0x2f   : > { %p643_p3 = pnand %p642_p13, %p636_p7 }
  0x31   : > { %646 = shalt.err (!%p643_p3)
}
  0x32   : > { %530 = dma.hbm_to_vmem [thread:$0]  (!%p836_p0), %s196_s7, 16, %s199_s18, %s188_s19  }
  0x33   : > { %216 = sbr.rel (%p853_p5) target bundleno = 323 (0x143), region = 32  ;;  %s870_s28 = sand.u32 (!%p853_p5), 1, %s715_s13  }
  0x34   : > { %s506_s22 = sshll.u32 (!%p853_p5), %s870_s28, 4  ;;  %s219_s23 = scalar_lea.sflag (!%p853_p5), [#allocation3], %s870_s28 }
  0x35   : > { %s222_s29 = scalar_lea.vmem (!%p853_p5), [#allocation2], %s506_s22 }
  0x38   : > { %698 = dma.done.wait (%p809_p8), %s219_s23, 256  }
  0x39   : > { %700 = vsyncadd (%p809_p8), %s219_s23, 4294967040  ;;  %s228_s9 = scalar_lea.sflag [#allocation6], %s870_s28  ;;  %s230_s30 = scalar_lea.vmem [#allocation5], %s870_s28 }
  0x3a   : > { %702 = dma.done.wait (%p809_p8), %s228_s9, 16  }
  0x3b   : > { %704 = vsyncadd (%p809_p8), %s228_s9, 4294967280  ;;  %p264_p0 = scmp.lt.s32.totalorder %s723_s15, 1  ;;  %v271_v0 = vld [vmem:[%s222_s29] sm:$0xff]  ;;  %v272_v1 = vld [vmem:[%s222_s29 + $0x8] sm:$0xff]  ;;  %vm277_vm0 = vcmask 1040384   ;;  %vm284_vm1 = vcmask 1046528  }
  0x3c   : > { %v273_v2 = vld [vmem:[%s230_s30] sm:$0x1]  ;;  %v278_v3 = vrot.slane %v271_v0, 7  ;;  %v285_v4 = vrot.slane %v271_v0, 1  ;;  %v286_v5 = vrot.slane %v272_v1, 1  ;;  %v297_v6 = vmul.f32 2.0, %v271_v0 }
  0x3d   : > { %s265_s4 = scalar_select %p264_p0, %s723_s15, 1  ;;  %v279_v8 = vrot.slane %v272_v1, 7  ;;  %v298_v9 = vmul.f32 2.0, %v272_v1  ;;  %vm313_vm2 = vcmask 7168   ;;  %vm316_vm3 = vcmask 138240  }
  0x3e   : > { %v283_v10 = vsel %vm277_vm0, %v273_v2, %v278_v3  ;;  %v287_v11 = vsel %vm284_vm1, %v285_v4, %v286_v5  ;;  %s737_s24 = smov 1   ;;  %s738_s18 = smov 126   ;;  %vm355_vm4 = vcmask 130048  }
  0x3f   : > { %s269_s11 = scalar_lea.vmem %s958_s2, %s265_s4  ;;  %v299_v12 = vadd.f32 %v297_v6, %v283_v10  ;;  %v303_v13 = vsub.f32 %v283_v10, %v287_v11  ;;  %v280_v14 = vsel %vm277_vm0, %v278_v3, %v279_v8  ;;  %s507_s19 = sshll.u32 %s870_s28, 5 }
  0x40   : > { %v508_v7 = vld [vmem:[%s269_s11] ss:$0 sm:$0xff]  ;;  %v300_v16 = vadd.f32 %v298_v9, %v280_v14  ;;  %s262_s21 = scalar_lea.vmem [#allocation7], %s507_s19  ;;  %s517_s8 = sshll.u32 %s723_s15, 9 }
  0x41   : > { %v296_v15 = vsel %vm284_vm1, %v286_v5, %v508_v7  ;;  %v301_v17 = vadd.f32 %v299_v12, %v287_v11  ;;  %321 = vrot.lane.b32.xlu1 %v303_v13, %s737_s24  ;;  %v341_v20 = vmul.f32 2.0, %v303_v13  ;;  %s377_s6 = sshll.u32 %s262_s21, 4  ;;  %s907_s23 = scalar_lea.hbm %s959_s3, %s517_s8  ;;  %s900_s6 = int_to_ptr.vmem [resolvable:$true] %s377_s6 }
  0x42   : > { %v304_v18 = vsub.f32 %v280_v14, %v296_v15  ;;  %v302_v19 = vadd.f32 %v300_v16, %v296_v15  ;;  %s362_s29 = scalar_lea.sflag [#allocation4], %s870_s28  ;;  %s647_s15 = scalar_lea.vmem %s900_s6, 512 }
  0x43   : > { %307 = vrot.lane.b32.xlu0 %v301_v17, %s737_s24  ;;  %p648_p8 = scmp.ne.s32.totalorder %s900_s6, %s647_s15  ;;  %s739_s9 = smov [#allocation7]  }
  0x44   : > { %v342_v27 = vmul.f32 2.0, %v304_v18  ;;  %s651_s30 = sshll.u32 %s739_s9, 4  ;;  %s652_s30 = int_to_ptr.vmem [resolvable:$false] %s651_s30 }
  0x45   : > { %323 = vrot.lane.b32.xlu1 %v304_v18, %s737_s24  ;;  %p649_p2 = pnand %p648_p8, %p813_p9  ;;  %s653_s4 = scalar_lea.vmem %s652_s30, 1024 }
  0x46   : > { %p654_p6 = scmp.lt.s32.totalorder %s900_s6, %s652_s30  ;;  %p655_p4 = scmp.lt.s32.totalorder %s653_s4, %s647_s15 }
  0x47   : > { %309 = vrot.lane.b32.xlu0 %v302_v19, %s737_s24  ;;  %p650_p5 = pneg %p649_p2 }
  0x48   : > { %p656_p7 = por %p655_p4, %p654_p6 }
  0x4a   : > { %p657_p1 = pnand %p656_p7, %p650_p5 }
  0xb3   : > { %v322_v21 = vpop.permute.xlu1 %321 }
  0xb4   : > { %v327_v22 = vsel %vm313_vm2, 0.0, %v322_v21 }
  0xb5   : > { %v308_v23 = vpop.permute.xlu0 %307  ;;  %v329_v24 = vsel %vm316_vm3, %v327_v22, 0.0 }
  0xb6   : > { %v314_v25 = vsel %vm313_vm2, 0.0, %v308_v23  ;;  %v343_v26 = vadd.f32 %v341_v20, %v329_v24 }
  0xb7   : > { %v317_v28 = vsel %vm316_vm3, %v314_v25, 0.0  ;;  %v324_v29 = vpop.permute.xlu1 %323 }
  0xb8   : > { %333 = vrot.lane.b32.xlu0 %v317_v28, %s738_s18  ;;  %v328_v30 = vsel %vm313_vm2, 0.0, %v324_v29 }
  0xb9   : > { %v310_v31 = vpop.permute.xlu0 %309  ;;  %v330_v32 = vsel %vm316_vm3, %v328_v30, 0.0 }
  0xba   : > { %v315_v33 = vsel %vm313_vm2, 0.0, %v310_v31  ;;  %v344_v34 = vadd.f32 %v342_v27, %v330_v32 }
  0xbb   : > { %v318_v35 = vsel %vm316_vm3, %v315_v33, 0.0 }
  0xbc   : > { %347 = vrot.lane.b32.xlu0 %v329_v24, %s738_s18  ;;  %335 = vrot.lane.b32.xlu1 %v318_v35, %s738_s18 }
  0xc0   : > { %349 = vrot.lane.b32.xlu1 %v330_v32, %s738_s18 }
 0x12a   : > { %v334_v36 = vpop.permute.xlu0 %333 }
 0x12b   : > { %v339_v37 = vsub.f32 %v317_v28, %v334_v36 }
 0x12d   : > { %356 = vst.msk [vmem:[%s262_s21] sm:$0xff] %vm355_vm4, %v339_v37 }
 0x12e   : > { %v336_v38 = vpop.permute.xlu1 %335  ;;  %v348_v39 = vpop.permute.xlu0 %347 }
 0x12f   : > { %v340_v40 = vsub.f32 %v318_v35, %v336_v38  ;;  %v353_v41 = vadd.f32 %v348_v39, %v343_v26 }
 0x131   : > { %357 = vst.msk [vmem:[%s262_s21 + $0x8] sm:$0xff] %vm355_vm4, %v340_v40  ;;  %509 = vst.msk [vmem:[%s262_s21 + $0x10] sm:$0xff] %vm355_vm4, %v353_v41 }
 0x132   : > { %v350_v42 = vpop.permute.xlu1 %349 }
 0x133   : > { %v354_v43 = vadd.f32 %v350_v42, %v344_v34 }
 0x135   : > { %510 = vst.msk [vmem:[%s262_s21 + $0x18] sm:$0xff] %vm355_vm4, %v354_v43 }
 0x136   : > { %660 = shalt.err (!%p657_p1)
}
 0x137   : > { %s661_s5 = scalar_lea.hbm %s907_s23, 512  ;;  %s665_s24 = scalar_lea.hbm %s959_s3, 1024 }
 0x138   : > { %p662_p10 = scmp.ne.s32.totalorder %s907_s23, %s661_s5  ;;  %p666_p0 = scmp.lt.s32.totalorder %s907_s23, %s959_s3 }
 0x139   : > { %p667_p8 = scmp.lt.s32.totalorder %s665_s24, %s661_s5 }
 0x13a   : > { %p663_p13 = pnand %p662_p10, %p813_p9 }
 0x13b   : > { %p668_p2 = por %p667_p8, %p666_p0 }
 0x13c   : > { %p664_p3 = pneg %p663_p13 }
 0x13e   : > { %p669_p5 = pnand %p668_p2, %p664_p3 }
 0x140   : > { %672 = shalt.err (!%p669_p5)
}
 0x141   : > { %s740_s21 = smov 128   ;;  %s741_s8 = smov 8  }
 0x142   : > { %522 = dma.vmem_to_hbm [thread:$0]  (%p813_p9), %s900_s6, 512, %s907_s23, %s362_s29, %s740_s21, %s740_s21, %s741_s8  }
 0x143 PF: > { %s392_s10 = sand.u32 1, %s711_s12   ;;  %p532_p6 = pnand %p500_p12, %p820_p11 }
 0x144   : > { %s393_s22 = scalar_lea.sflag [#allocation4], %s392_s10 }
 0x145   : > { %p533_p4 = pneg %p532_p6 }
 0x147   : > { %706 = dma.done.wait (%p533_p4), %s393_s22, 512  }
 0x148   : > { %708 = vsyncadd (%p533_p4), %s393_s22, 4294966784  ;;  %s22_s17 = sadd.s32 1, %s731_s17   ;;  %s966_s12 = smov %s715_s13 }
 0x149   : > { %p19_p7 = scmp.ge.s32.totalorder %s22_s17, 4   ;;  %s967_s13 = smov %s719_s14 }
 0x14a   : > { %s968_s14 = smov %s818_s26  ;;  %s969_s15 = smov %s727_s16 }
 0x14b   : > { %s970_s16 = smov %s972_s20  ;;  %21 = sbr.rel (!%p19_p7) target bundleno = 8 (0x8), region = 94 }
 0x150   :  { %398 = vsyncpa [#allocation3], 1 }
 0x151   :  { %400 = vsyncpa [#allocation3 + $0x1], 1 }
 0x152   :  { %401 = vsyncpa [#allocation6], 1 }
 0x153   :  { %403 = vsyncpa [#allocation6 + $0x1], 1 }
 0x154   :  { %404 = vsyncpa [#allocation4], 1 }
 0x155   :  { %406 = vsyncpa [#allocation4 + $0x1], 1 }

</bundles_post_ra>
